<compile_context>
chip_gen: v6e
topology: v6e:2x2x1
jax: 0.10.0
libtpu: 0.0.40
codegen_flags: <defaults>
</compile_context>

<pallas_src>
import functools

import jax
import jax.numpy as jnp
from jax.experimental import pallas as pl
from jax.experimental.pallas import tpu as pltpu

LANES = 128
MAX_TILE_ROWS = 2048   # 2048*128*4B = 1 MiB / input block -> safe on v5e's 16 MiB scoped VMEM
NUM_CHUNKS = 2         # leading "parallel" axis (2 TCs on v7x); clamped to #blocks


def _huber_partial_kernel(x_ref, y_ref, o_ref, *, inv_beta, valid_rows):
    c = pl.program_id(0)
    i = pl.program_id(1)

    @pl.when(i == 0)
    def _():
        o_ref[...] = jnp.zeros_like(o_ref)

    x = x_ref[...].astype(jnp.float32)
    y = y_ref[...].astype(jnp.float32)

    # smooth_l1 (beta=1) on the pre-scaled difference, without a select:
    #   t = min(|d|, 1);  loss = t * (|d| - 0.5 * t)
    d = (x - y) * inv_beta
    ad = jnp.abs(d)
    t = jnp.minimum(ad, 1.0)
    loss = t * (ad - 0.5 * t)

    # Mask rows that fall beyond the true row count (boundary-block garbage
    # and fully out-of-range duplicate blocks from the chunked grid).
    tile_rows = x_ref.shape[0]
    block_idx = c * pl.num_programs(1) + i
    row_start = block_idx * tile_rows
    row_ids = jax.lax.broadcasted_iota(jnp.int32, loss.shape, 0)
    valid = (row_start + row_ids) < valid_rows
    loss = jnp.where(valid, loss, 0.0)

    # Lane-wise partial sum; keeps the per-step reduce per-lane only.
    o_ref[...] += jnp.sum(loss, axis=0, keepdims=True)[None]


def huber_loss(outputs, targets, *, beta, rec_weight):
    assert outputs.shape == targets.shape
    n_elems = outputs.size

    x = outputs.reshape(-1)
    y = targets.reshape(-1)

    itemsize = jnp.dtype(outputs.dtype).itemsize
    min_rows = 8 if itemsize >= 4 else (16 if itemsize == 2 else 32)

    # Lane padding only when needed (common aligned shapes stay copy-free).
    rows = -(-n_elems // LANES)
    rows = max(rows, min_rows)
    padded = rows * LANES
    if padded != n_elems:
        x = jnp.pad(x, (0, padded - n_elems))
        y = jnp.pad(y, (0, padded - n_elems))
    x2 = x.reshape(rows, LANES)
    y2 = y.reshape(rows, LANES)

    tile_rows = min(MAX_TILE_ROWS, (rows // min_rows) * min_rows)
    blocks_total = -(-rows // tile_rows)
    num_chunks = min(NUM_CHUNKS, blocks_total)
    inner = -(-blocks_total // num_chunks)

    def in_map(c, i):
        # Clamp so excess grid points (when blocks_total % num_chunks != 0)
        # re-read the last block; their contribution is masked to zero.
        blk = jnp.minimum(c * inner + i, blocks_total - 1)
        return (blk, 0)

    kernel = functools.partial(
        _huber_partial_kernel,
        inv_beta=float(1.0 / beta),
        valid_rows=rows,
    )

    partials = pl.pallas_call(
        kernel,
        out_shape=jax.ShapeDtypeStruct((num_chunks, 1, LANES), jnp.float32),
        grid_spec=pltpu.PrefetchScalarGridSpec(
            num_scalar_prefetch=0,
            grid=(num_chunks, inner),
            in_specs=[
                pl.BlockSpec((tile_rows, LANES), in_map),
                pl.BlockSpec((tile_rows, LANES), in_map),
            ],
            out_specs=pl.BlockSpec((1, 1, LANES), lambda c, i: (c, 0, 0)),
        ),
        compiler_params=pltpu.CompilerParams(
            dimension_semantics=("parallel", "arbitrary"),
        ),
    )(x2, y2)

    # Single cross-lane / cross-chunk reduce + scaling (tiny) in plain JAX.
    final_loss = jnp.sum(partials) * (beta / n_elems)
    return final_loss, rec_weight


if __name__ == "__main__":
    cfg = {"beta": 0.5, "rec_weight": 2.0}

    key = jax.random.PRNGKey(0)
    k1, k2 = jax.random.split(key)
    # shapes consistent with a diffusion reconstruction loss: NCHW
    outputs = jax.random.normal(k1, (2, 4, 16, 16), dtype=jnp.float32)
    targets = jax.random.normal(k2, (2, 4, 16, 16), dtype=jnp.float32)

    loss, rec_w = huber_loss(
        outputs, targets, beta=cfg["beta"], rec_weight=cfg["rec_weight"]
    )
    loss = jax.block_until_ready(loss)

    # Pure-JAX reference: F.smooth_l1_loss(x/beta, y/beta) * beta
    d = outputs / cfg["beta"] - targets / cfg["beta"]
    ad = jnp.abs(d)
    ref = jnp.mean(jnp.where(ad < 1.0, 0.5 * d * d, ad - 0.5)) * cfg["beta"]
    assert jnp.allclose(loss, ref, rtol=1e-5, atol=1e-6), (loss, ref)
    assert rec_w == cfg["rec_weight"]

    print("KERNEL_OK")
</pallas_src>

<mosaic_0001>
module attributes {stable_mosaic.version = 11 : i64} {
  func.func @_huber_partial_kernel(%arg0: i32, %arg1: i32, %arg2: memref<16x128xf32, #tpu.memory_space<vmem>>, %arg3: memref<16x128xf32, #tpu.memory_space<vmem>>, %arg4: memref<1x1x128xf32, #tpu.memory_space<vmem>>) attributes {dimension_semantics = [#tpu.dimension_semantics<parallel>, #tpu.dimension_semantics<arbitrary>], iteration_bounds = array<i64: 1, 1>, scalar_prefetch = 0 : i64, scratch_operands = 0 : i64, tpu.core_type = #tpu.core_type<tc>, window_params = [{transform_indices = @transform_0, window_bounds = array<i64: 16, 128>}, {transform_indices = @transform_1, window_bounds = array<i64: 16, 128>}, {transform_indices = @transform_2, window_bounds = array<i64: 1, 1, 128>}]} {
    %c0_i32 = arith.constant 0 : i32
    %0 = arith.cmpi eq, %arg1, %c0_i32 : i32
    %1 = arith.extui %0 : i1 to i32
    %c0_i32_0 = arith.constant 0 : i32
    %2 = arith.cmpi ne, %1, %c0_i32_0 : i32
    scf.if %2 {
      %cst_15 = arith.constant 0.000000e+00 : f32
      %31 = vector.broadcast %cst_15 : f32 to vector<1x1x128xf32>
      %c0_16 = arith.constant 0 : index
      %c0_17 = arith.constant 0 : index
      %c0_18 = arith.constant 0 : index
      %32 = vector.load %arg4[%c0_16, %c0_17, %c0_18] : memref<1x1x128xf32, #tpu.memory_space<vmem>>, vector<1x1x128xf32>
      tpu.vector_store %arg4[%c0_16, %c0_17, %c0_18], %31 {strides = array<i32>} : memref<1x1x128xf32, #tpu.memory_space<vmem>>, vector<1x1x128xf32>,
    } else {
    }
    %c0 = arith.constant 0 : index
    %c0_1 = arith.constant 0 : index
    %3 = vector.load %arg2[%c0, %c0_1] : memref<16x128xf32, #tpu.memory_space<vmem>>, vector<16x128xf32>
    %c0_2 = arith.constant 0 : index
    %c0_3 = arith.constant 0 : index
    %4 = vector.load %arg3[%c0_2, %c0_3] : memref<16x128xf32, #tpu.memory_space<vmem>>, vector<16x128xf32>
    %5 = arith.subf %3, %4 : vector<16x128xf32>
    %cst = arith.constant 2.000000e+00 : f32
    %6 = vector.broadcast %cst : f32 to vector<16x128xf32>
    %7 = arith.mulf %5, %6 : vector<16x128xf32>
    %8 = math.absf %7 : vector<16x128xf32>
    %cst_4 = arith.constant 1.000000e+00 : f32
    %9 = vector.broadcast %cst_4 : f32 to vector<16x128xf32>
    %10 = arith.minimumf %8, %9 : vector<16x128xf32>
    %cst_5 = arith.constant 5.000000e-01 : f32
    %11 = vector.broadcast %cst_5 : f32 to vector<16x128xf32>
    %12 = arith.mulf %11, %10 : vector<16x128xf32>
    %13 = arith.subf %8, %12 : vector<16x128xf32>
    %14 = arith.mulf %10, %13 : vector<16x128xf32>
    %c1_i32 = arith.constant 1 : i32
    %15 = arith.muli %arg0, %c1_i32 : i32
    %16 = arith.addi %15, %arg1 : i32
    %c16_i32 = arith.constant 16 : i32
    %17 = arith.muli %16, %c16_i32 : i32
    %18 = tpu.iota {dimensions = array<i32: 0>} : vector<16x128xi32>
    %19 = vector.broadcast %17 : i32 to vector<16x128xi32>
    %20 = arith.addi %19, %18 : vector<16x128xi32>
    %c16_i32_6 = arith.constant 16 : i32
    %21 = vector.broadcast %c16_i32_6 : i32 to vector<16x128xi32>
    %22 = arith.cmpi slt, %20, %21 : vector<16x128xi32>
    %cst_7 = arith.constant 0.000000e+00 : f32
    %23 = vector.broadcast %cst_7 : f32 to vector<16x128xf32>
    %24 = arith.select %22, %14, %23 : vector<16x128xi1>, vector<16x128xf32>
    %c0_8 = arith.constant 0 : index
    %c0_9 = arith.constant 0 : index
    %c0_10 = arith.constant 0 : index
    %25 = vector.load %arg4[%c0_8, %c0_9, %c0_10] : memref<1x1x128xf32, #tpu.memory_space<vmem>>, vector<1x1x128xf32>
    %cst_11 = arith.constant dense<0.000000e+00> : vector<128xf32>
    %26 = vector.multi_reduction <add>, %24, %cst_11 [0] : vector<16x128xf32> to vector<128xf32>
    %27 = vector.shape_cast %26 : vector<128xf32> to vector<1x128xf32>
    %28 = vector.shape_cast %27 : vector<1x128xf32> to vector<1x1x128xf32>
    %29 = arith.addf %25, %28 : vector<1x1x128xf32>
    %c0_12 = arith.constant 0 : index
    %c0_13 = arith.constant 0 : index
    %c0_14 = arith.constant 0 : index
    %30 = vector.load %arg4[%c0_12, %c0_13, %c0_14] : memref<1x1x128xf32, #tpu.memory_space<vmem>>, vector<1x1x128xf32>
    tpu.vector_store %arg4[%c0_12, %c0_13, %c0_14], %29 {strides = array<i32>} : memref<1x1x128xf32, #tpu.memory_space<vmem>>, vector<1x1x128xf32>,
    return
  }
  func.func @transform_0(%arg0: i32, %arg1: i32) -> (i32, i32) {
    %c1_i32 = arith.constant 1 : i32
    %0 = arith.muli %arg0, %c1_i32 : i32
    %1 = arith.addi %0, %arg1 : i32
    %c0_i32 = arith.constant 0 : i32
    %2 = arith.minsi %1, %c0_i32 : i32
    %c0_i32_0 = arith.constant 0 : i32
    %c0_i32_1 = arith.constant 0 : i32
    return %2, %c0_i32_0 : i32, i32
  }
  func.func @transform_1(%arg0: i32, %arg1: i32) -> (i32, i32) {
    %c1_i32 = arith.constant 1 : i32
    %0 = arith.muli %arg0, %c1_i32 : i32
    %1 = arith.addi %0, %arg1 : i32
    %c0_i32 = arith.constant 0 : i32
    %2 = arith.minsi %1, %c0_i32 : i32
    %c0_i32_0 = arith.constant 0 : i32
    %c0_i32_1 = arith.constant 0 : i32
    return %2, %c0_i32_0 : i32, i32
  }
  func.func @transform_2(%arg0: i32, %arg1: i32) -> (i32, i32, i32) {
    %c0_i32 = arith.constant 0 : i32
    %c0_i32_0 = arith.constant 0 : i32
    %c0_i32_1 = arith.constant 0 : i32
    return %arg0, %c0_i32, %c0_i32_0 : i32, i32, i32
  }
}

</mosaic_0001>

<bundles_post_ra>
// kernel: tpu_custom_call.1
= control target key start
LH: loop header
LB: loop body
LE: loop exit
PB: predicated region body
PF: predicated region fallthrough
CT: control target
= control target key end

     0   :  { %7 = vsyncpa [#allocation3], 0  ;;  %s227_s0 = inlined_call_operand.hbm [shape: f32[16,128], index: 0, kind: input, shape index: {}]   ;;  %s228_s1 = inlined_call_operand.hbm [shape: f32[16,128], index: 1, kind: input, shape index: {}]   ;;  %s229_s2 = inlined_call_operand.hbm [shape: f32[1,1,128], index: 2, kind: output, shape index: {}]  }
   0x1   :  { %8 = vsyncpa [#allocation6], 0 }
   0x2   :  { %9 = vsyncpa [#allocation4], 0  ;;  %s197_s9 = smov [#allocation2]  }
   0x3   :  { %s21_s10 = sshll.u32 %s197_s9, 4  ;;  %s22_s10 = int_to_ptr.vmem [resolvable:$true] %s21_s10 }
   0x4   :  { %s139_s11 = scalar_lea.vmem %s22_s10, 256  ;;  %p144_p1 = scmp.lt.s32.totalorder %s22_s10, %s22_s10 }
   0x5   :  { %p140_p0 = scmp.ne.s32.totalorder %s22_s10, %s139_s11  ;;  %p145_p2 = scmp.lt.s32.totalorder %s139_s11, %s139_s11 }
   0x7   :  { %p146_p3 = por %p145_p2, %p144_p1 }
   0x9   :  { %p147_p4 = pnand %p146_p3, %p140_p0 }
   0xb   :  { %150 = shalt.err (!%p147_p4)
}
   0xc   :  { %s198_s12 = smov 128   ;;  %s199_s13 = smov 8  }
   0xd   :  { %27 = dma.hbm_to_vmem [thread:$0]  %s227_s0, 256, %s22_s10, [#allocation3], %s198_s12, %s198_s12, %s199_s13  }
   0xe   :  { %s200_s16 = smov [#allocation5]  }
   0xf   :  { %s39_s17 = sshll.u32 %s200_s16, 4  ;;  %s40_s17 = int_to_ptr.vmem [resolvable:$true] %s39_s17 }
  0x10   :  { %s159_s18 = scalar_lea.vmem %s40_s17, 256  ;;  %p164_p6 = scmp.lt.s32.totalorder %s40_s17, %s40_s17 }
  0x11   :  { %p160_p5 = scmp.ne.s32.totalorder %s40_s17, %s159_s18  ;;  %p165_p7 = scmp.lt.s32.totalorder %s159_s18, %s159_s18 }
  0x13   :  { %p166_p8 = por %p165_p7, %p164_p6 }
  0x15   :  { %p167_p9 = pnand %p166_p8, %p160_p5 }
  0x17   :  { %170 = shalt.err (!%p167_p9)
}
  0x18   :  { %45 = dma.hbm_to_vmem [thread:$0]  %s228_s1, 256, %s40_s17, [#allocation6], %s198_s12, %s198_s12, %s199_s13  }
  0x19   :  { %191 = dma.done.wait [#allocation3], 256  }
  0x1a   :  { %192 = vsyncadd [#allocation3], 4294967040 }
  0x1b   :  { %193 = dma.done.wait [#allocation6], 256  }
  0x1c   :  { %194 = vsyncadd [#allocation6], 4294967040  ;;  %v201_v0 = vmov 0.0   ;;  %v65_v1 = vld [vmem:[#allocation2] sm:$0xff]  ;;  %v66_v2 = vld [vmem:[#allocation2 + $0x8] sm:$0xff]  ;;  %s202_s0 = smov [#allocation7]  }
  0x1d   :  { %64 = vst [vmem:[#allocation7] sm:$0x1] %v201_v0  ;;  %v67_v3 = vld [vmem:[#allocation5] sm:$0xff]  ;;  %v68_v4 = vld [vmem:[#allocation5 + $0x8] sm:$0xff]  ;;  %s111_s1 = sshll.u32 %s202_s0, 4  ;;  %s112_s1 = int_to_ptr.vmem [resolvable:$true] %s111_s1 }
  0x1e   :  { %v69_v5 = vsub.f32 %v65_v1, %v67_v3  ;;  %v70_v6 = vsub.f32 %v66_v2, %v68_v4  ;;  %s171_s21 = scalar_lea.vmem %s112_s1, 16  ;;  %s175_s22 = scalar_lea.vmem %s112_s1, 32 }
  0x1f   :  { %p172_p10 = scmp.ne.s32.totalorder %s112_s1, %s171_s21  ;;  %p176_p11 = scmp.lt.s32.totalorder %s112_s1, %s112_s1 }
  0x20   :  { %v71_v7 = vmul.f32 2.0, %v69_v5  ;;  %v72_v8 = vmul.f32 2.0, %v70_v6  ;;  %p177_p12 = scmp.lt.s32.totalorder %s175_s22, %s171_s21 }
  0x22   :  { %v73_v9 = vand.u32 2147483647, %v71_v7  ;;  %v74_v10 = vand.u32 2147483647, %v72_v8  ;;  %p178_p13 = por %p177_p12, %p176_p11 }
  0x24   :  { %v75_v11 = vmin.f32 %v73_v9, 1.0  ;;  %v76_v12 = vmin.f32 %v74_v10, 1.0  ;;  %v95_v25 = vld [vmem:[#allocation7] sm:$0x1]  ;;  %p179_p0 = pnand %p178_p13, %p172_p10 }
  0x26   :  { %v77_v13 = vmul.f32 0.5, %v75_v11  ;;  %v78_v14 = vmul.f32 0.5, %v76_v12 }
  0x28   :  { %v79_v15 = vsub.f32 %v73_v9, %v77_v13  ;;  %v80_v16 = vsub.f32 %v74_v10, %v78_v14 }
  0x2a   :  { %v81_v17 = vmul.f32 %v79_v15, %v75_v11  ;;  %v82_v18 = vmul.f32 %v80_v16, %v76_v12 }
  0x2c   :  { %v96_v19 = vadd.f32 %v82_v18, %v81_v17 }
  0x2e   :  { %v97_v20 = vrot.slane %v96_v19, 4 }
  0x30   :  { %v98_v21 = vadd.f32 %v97_v20, %v96_v19 }
  0x32   :  { %v99_v22 = vrot.slane %v98_v21, 2 }
  0x34   :  { %v100_v23 = vadd.f32 %v99_v22, %v98_v21 }
  0x36   :  { %v101_v24 = vrot.slane %v100_v23, 1 }
  0x38   :  { %v102_v26 = vadd.f32 %v101_v24, %v100_v23 }
  0x3a   :  { %v103_v27 = vadd.f32 %v102_v26, %v95_v25 }
  0x3c   :  { %104 = vst [vmem:[#allocation7] sm:$0x1] %v103_v27 }
  0x3d   :  { %182 = shalt.err (!%p179_p0)
}
  0x3e   :  { %114 = dma.vmem_to_hbm [thread:$0]  %s112_s1, 16, %s229_s2, [#allocation4]  }
  0x3f   :  { %195 = dma.done.wait [#allocation4], 16  }
  0x40   :  { %196 = vsyncadd [#allocation4], 4294967280 }
  0x41   :  { %118 = vsyncpa [#allocation3], 1 }
  0x42   :  { %119 = vsyncpa [#allocation6], 1 }
  0x43   :  { %120 = vsyncpa [#allocation4], 1 }

</bundles_post_ra>
